<compile_context>
chip_gen: v5e
topology: v5e:2x2
jax: 0.10.0
libtpu: 0.0.40
codegen_flags: <defaults>
</compile_context>

<pallas_src>
import functools
import numpy as np
import jax
import jax.numpy as jnp
from jax.experimental import pallas as pl
from jax.experimental.pallas import tpu as pltpu

_EPS = 1e-5  # PyTorch LayerNorm default eps


def _round_up(x, m):
    return (x + m - 1) // m * m


def _layernorm(y, g, bt):
    mu = jnp.mean(y, axis=-1, keepdims=True)
    var = jnp.mean((y - mu) ** 2, axis=-1, keepdims=True)
    return (y - mu) * jax.lax.rsqrt(var + _EPS) * g + bt


# --------------------------- kernel 1: projection ----------------------------

def _proj_ln_kernel(x_ref, w_ref, b_ref, g_ref, bt_ref, ln_ref, raw_ref):
    # 1x1 in_conv on a pixel tile (bf16 feed, f32 accumulate); emit both the raw
    # projection (values) and its LayerNorm (queries / keys).
    y = jnp.dot(x_ref[...], w_ref[...], preferred_element_type=jnp.float32) + b_ref[...]
    raw_ref[...] = y
    ln_ref[...] = _layernorm(y, g_ref[...], bt_ref[...])


def _fused_projection(x_cat, W_in, b_in, g, bt, *, tile_p=512):
    """in_conv + (LayerNorm | raw) over all query+exemplar pixels, row-tiled."""
    Ptot, C = x_cat.shape
    tp = min(tile_p, _round_up(Ptot, 16))
    Ppad = _round_up(Ptot, tp)
    if Ppad != Ptot:
        x_cat = jnp.pad(x_cat, ((0, Ppad - Ptot), (0, 0)))
    row_spec = pl.BlockSpec((tp, C), lambda i: (i, 0))
    pin = lambda shape: pl.BlockSpec(shape, lambda i: (0, 0))
    ln_out, raw_out = pl.pallas_call(
        _proj_ln_kernel,
        out_shape=(jax.ShapeDtypeStruct((Ppad, C), jnp.float32),
                   jax.ShapeDtypeStruct((Ppad, C), jnp.float32)),
        grid=(Ppad // tp,),
        in_specs=[row_spec, pin((C, C)), pin((1, C)), pin((1, C)), pin((1, C))],
        out_specs=(row_spec, row_spec),
        compiler_params=pltpu.CompilerParams(
            dimension_semantics=("parallel",),
            vmem_limit_bytes=32 * 1024 * 1024),
    )(x_cat, W_in, b_in, g, bt)
    return ln_out[:Ptot], raw_out[:Ptot]


# ------------- kernel 2: attention + aggregation + out_conv + FFN ------------

def _aggt_ffn_kernel(tgt_ref, q_ref, kb_ref, vw_ref, bo_ref,
                     w1_ref, b1_ref, w2_ref, b2_ref,
                     g1_ref, bt1_ref, g2_ref, bt2_ref,
                     o_ref, qpatch_ref, apatch_ref, xpatch_ref, hpatch_ref, *,
                     head, MN, Hp, Wp, Hq, Wq, mid, C, scale):
    P = Hq * Wq
    HM = head * MN
    ph, pw = Hp // 2, Wp // 2

    # Hoisted pixel-index vectors; validity masks are cached per (dy, dx) so the
    # iota / compares are emitted once per distinct offset, not per call site.
    pix = jax.lax.broadcasted_iota(jnp.int32, (P, 1), 0)
    row = pix // Wq
    col = pix - row * Wq
    _masks = {}

    def _shift2d(x, dy, dx):
        # out[p=(y,x), :] = x[(y+dy)*Wq + (x+dx), :] if in-bounds else 0.
        # pltpu.roll keeps the data movement on the XLU; roll wrap is masked away.
        if dy == 0 and dx == 0:
            return x
        if (dy, dx) not in _masks:
            _masks[(dy, dx)] = ((row + dy >= 0) & (row + dy < Hq) &
                                (col + dx >= 0) & (col + dx < Wq))
        S = dy * Wq + dx
        r = pltpu.roll(x, (-S) % P, 0) if S % P != 0 else x
        return jnp.where(_masks[(dy, dx)], r, 0.0)

    # ---- (a) similarity scores: Hp*Wp shifted q tiles packed along lanes, ONE matmul
    q = q_ref[...].astype(jnp.float32)
    for i in range(Hp):
        for j in range(Wp):
            t = i * Wp + j
            qpatch_ref[:, t * C:(t + 1) * C] = (
                _shift2d(q, i - ph, j - pw).astype(jnp.bfloat16))
    s_all = jnp.dot(qpatch_ref[...], kb_ref[...],
                    preferred_element_type=jnp.float32) * scale      # (P, head*MN)

    # ---- (b) exp + double normalization (per head, f32).  Per-head max subtracted
    #      for overflow safety; it cancels exactly in both sn and en.
    attn_cols = []
    for h in range(head):
        sh = s_all[:, h * MN:(h + 1) * MN]
        sh = sh - jnp.max(jnp.max(sh, axis=1, keepdims=True), axis=0, keepdims=True)
        a = jnp.exp(sh)
        sn = a * pl.reciprocal(jnp.max(a, axis=0, keepdims=True), approx=True)
        en = a * pl.reciprocal(jnp.sum(a, axis=1, keepdims=True), approx=True)
        attn_cols.append(sn * en)
    attn = jnp.concatenate(attn_cols, axis=1)                        # (P, head*MN)

    # ---- (c) aggregation (spatially flipped taps) + folded 1x1 out_conv: ONE matmul
    for a_ in range(Hp):
        for b_ in range(Wp):
            u = a_ * Wp + b_
            apatch_ref[:, u * HM:(u + 1) * HM] = (
                _shift2d(attn, a_ - ph, b_ - pw).astype(jnp.bfloat16))
    tgt2 = jnp.dot(apatch_ref[...], vw_ref[...],
                   preferred_element_type=jnp.float32) + bo_ref[...]  # (P, C)

    # ---- (d) FFN tail: norm1 -> conv1(3x3)+ReLU -> conv2(3x3) -> norm2 ----------
    x1 = _layernorm(tgt_ref[...] + tgt2, g1_ref[...], bt1_ref[...])
    for ki in range(3):
        for kj in range(3):
            t = ki * 3 + kj
            xpatch_ref[:, t * C:(t + 1) * C] = (
                _shift2d(x1, ki - 1, kj - 1).astype(jnp.bfloat16))
    hmid = jnp.dot(xpatch_ref[...], w1_ref[...],
                   preferred_element_type=jnp.float32) + b1_ref[...]
    hmid = jnp.maximum(hmid, 0.0)                                    # ReLU
    for ki in range(3):
        for kj in range(3):
            t = ki * 3 + kj
            hpatch_ref[:, t * mid:(t + 1) * mid] = (
                _shift2d(hmid, ki - 1, kj - 1).astype(jnp.bfloat16))
    y = jnp.dot(hpatch_ref[...], w2_ref[...],
                preferred_element_type=jnp.float32) + b2_ref[...]
    o_ref[...] = _layernorm(x1 + y, g2_ref[...], bt2_ref[...])


def _fused_aggregation_ffn(tgt_flat, q16, Kbig, VW, b_out, w1, b1, w2, b2,
                           g1, bt1, g2, bt2, *,
                           head, MN, Hp, Wp, Hq, Wq, mid, C, scale):
    P = Hq * Wq
    HW = Hp * Wp
    HM = head * MN
    kern = functools.partial(_aggt_ffn_kernel, head=head, MN=MN, Hp=Hp, Wp=Wp,
                             Hq=Hq, Wq=Wq, mid=mid, C=C, scale=scale)
    flops = 2 * P * (HW * C * HM + HW * HM * C + 9 * C * mid + 9 * mid * C)
    bytes_accessed = (4 * P * C * 2 + 2 * P * C
                      + 2 * (HW * C * HM + HW * HM * C + 9 * C * mid + 9 * mid * C))
    return pl.pallas_call(
        kern,
        out_shape=jax.ShapeDtypeStruct((P, C), jnp.float32),
        scratch_shapes=[
            pltpu.VMEM((P, HW * C), jnp.bfloat16),    # q_patch   (score taps)
            pltpu.VMEM((P, HW * HM), jnp.bfloat16),   # attn_patch (aggregation taps)
            pltpu.VMEM((P, 9 * C), jnp.bfloat16),     # conv1 im2col
            pltpu.VMEM((P, 9 * mid), jnp.bfloat16),   # conv2 im2col
        ],
        compiler_params=pltpu.CompilerParams(vmem_limit_bytes=32 * 1024 * 1024),
        cost_estimate=pl.CostEstimate(flops=flops, transcendentals=P * HM,
                                      bytes_accessed=bytes_accessed),
    )(tgt_flat, q16, Kbig, VW, b_out, w1, b1, w2, b2, g1, bt1, g2, bt2)


# ----------------------------- Pallas forward --------------------------------

def _forward_pallas(params, tgt, src, head):
    _, C, Hq, Wq = tgt.shape
    MN, _, Hp, Wp = src.shape
    assert Hp % 2 == 1 and Wp % 2 == 1, "exemplar spatial dims must be odd"
    assert C % head == 0
    hd = C // head
    P = Hq * Wq
    PK = MN * Hp * Wp
    HW = Hp * Wp

    # NCHW -> pixel-major channels-last
    tgt_flat = jnp.transpose(tgt[0], (1, 2, 0)).reshape(P, C)
    src_flat = jnp.transpose(src, (0, 2, 3, 1)).reshape(PK, C)

    W_in = params["in_conv_w"].reshape(C, C).T
    b_in = params["in_conv_b"].reshape(1, C)
    g_n = params["aggt_norm_g"].reshape(1, C)
    bt_n = params["aggt_norm_b"].reshape(1, C)

    # (1) one fused projection over [query pixels ; exemplar pixels]
    x_cat = jnp.concatenate([tgt_flat, src_flat], axis=0)
    ln_out, raw_out = _fused_projection(
        x_cat.astype(jnp.bfloat16), W_in.astype(jnp.bfloat16), b_in, g_n, bt_n)
    q_norm = ln_out[:P]                       # LayerNorm'd query
    k_norm = ln_out[P:P + PK]                 # LayerNorm'd keys
    v_proj = raw_out[P:P + PK]                # values: in_conv only, no LayerNorm

    # Head-block-diagonal key / (value @ out_conv) matrices: the Hp*Wp taps AND the
    # head structure live in the contraction dim, so the kernel runs ONE matmul per
    # phase instead of head*Hp*Wp tiny lane-sparse ones.
    hsel = ((jnp.arange(C) // hd)[:, None] ==
            jnp.arange(head)[None, :]).astype(jnp.float32)            # (C, head)
    k_t = jnp.transpose(k_norm.reshape(MN, HW, C), (1, 2, 0))          # (HW, C, MN)
    Kbig = (k_t[:, :, None, :] * hsel[None, :, :, None]).reshape(HW * C, head * MN)

    v_flip = v_proj.reshape(MN, Hp, Wp, C)[:, ::-1, ::-1, :].reshape(MN, HW, C)
    v_t = jnp.transpose(v_flip, (1, 0, 2))                             # (HW, MN, C)
    Vbig = (v_t[:, None, :, :] * hsel.T[None, :, None, :]).reshape(HW * head * MN, C)

    W_out = params["out_conv_w"].reshape(C, C).T
    b_out = params["out_conv_b"].reshape(1, C)
    VW = jnp.dot(Vbig, W_out, precision=jax.lax.Precision.HIGHEST)     # fold out_conv

    mid = params["conv1_w"].shape[0]
    w1_arr = jnp.transpose(params["conv1_w"], (2, 3, 1, 0)).reshape(9 * C, mid)
    w2_arr = jnp.transpose(params["conv2_w"], (2, 3, 1, 0)).reshape(9 * mid, C)
    b1 = params["conv1_b"].reshape(1, mid)
    b2 = params["conv2_b"].reshape(1, C)
    g1 = params["norm1_g"].reshape(1, C)
    bt1 = params["norm1_b"].reshape(1, C)
    g2 = params["norm2_g"].reshape(1, C)
    bt2 = params["norm2_b"].reshape(1, C)

    # (2) fused attention + aggregation + out_conv + FFN tail
    out_flat = _fused_aggregation_ffn(
        tgt_flat, q_norm.astype(jnp.bfloat16), Kbig.astype(jnp.bfloat16),
        VW.astype(jnp.bfloat16), b_out,
        w1_arr.astype(jnp.bfloat16), b1, w2_arr.astype(jnp.bfloat16), b2,
        g1, bt1, g2, bt2,
        head=head, MN=MN, Hp=Hp, Wp=Wp, Hq=Hq, Wq=Wq, mid=mid, C=C,
        scale=float(C * Hp * Wp) ** (-0.5))

    return jnp.transpose(out_flat.reshape(Hq, Wq, C), (2, 0, 1))[None]


# ----------------------------- pure-JAX reference ----------------------------
# Independent (im2col/einsum, f32 HIGHEST) formulation used only to validate kernels.

def _ref_linear(x, w, b, relu=False, ln=None):
    y = jnp.dot(x, w, precision=jax.lax.Precision.HIGHEST) + b
    if relu:
        y = jnp.maximum(y, 0.0)
    if ln is not None:
        y = _layernorm(y, ln[0], ln[1])
    return y


def build_query_cols(q_heads, Hp, Wp):
    head, hd, Hq, Wq = q_heads.shape
    ph, pw = Hp // 2, Wp // 2
    qp = jnp.pad(q_heads, ((0, 0), (0, 0), (ph, ph), (pw, pw)))
    cols = [qp[:, :, i:i + Hq, j:j + Wq] for i in range(Hp) for j in range(Wp)]
    cols = jnp.stack(cols, axis=0)
    cols = jnp.transpose(cols, (1, 3, 4, 2, 0))
    return cols.reshape(head, Hq * Wq, hd * Hp * Wp)


def build_attn_patch(attn, Hq, Wq, Hp, Wp):
    head, _, MN = attn.shape
    ph, pw = Hp // 2, Wp // 2
    a = jnp.transpose(attn.reshape(head, Hq, Wq, MN), (0, 3, 1, 2))
    ap = jnp.pad(a, ((0, 0), (0, 0), (ph, ph), (pw, pw)))
    cols = [ap[:, :, Hp - 1 - i:Hp - 1 - i + Hq, Wp - 1 - j:Wp - 1 - j + Wq]
            for i in range(Hp) for j in range(Wp)]
    cols = jnp.stack(cols, axis=0)
    cols = jnp.transpose(cols, (1, 3, 4, 2, 0))
    return cols.reshape(head, Hq * Wq, MN * Hp * Wp)


def build_conv3_patches(x_hwc):
    H, W, Cin = x_hwc.shape
    xp = jnp.pad(x_hwc, ((1, 1), (1, 1), (0, 0)))
    cols = [xp[ki:ki + H, kj:kj + W, :] for ki in range(3) for kj in range(3)]
    cols = jnp.stack(cols, axis=0)
    cols = jnp.transpose(cols, (1, 2, 3, 0))
    return cols.reshape(H * W, Cin * 9)


def _forward_reference(params, tgt, src, head):
    _, C, Hq, Wq = tgt.shape
    MN, _, Hp, Wp = src.shape
    hd = C // head
    P = Hq * Wq
    tgt_flat = jnp.transpose(tgt[0], (1, 2, 0)).reshape(P, C)
    src_flat = jnp.transpose(src, (0, 2, 3, 1)).reshape(MN * Hp * Wp, C)
    W_in = params["in_conv_w"].reshape(C, C).T
    b_in = params["in_conv_b"].reshape(1, C)
    g_n = params["aggt_norm_g"].reshape(1, C)
    bt_n = params["aggt_norm_b"].reshape(1, C)
    q_norm = _ref_linear(tgt_flat, W_in, b_in, ln=(g_n, bt_n))
    k_norm = _ref_linear(src_flat, W_in, b_in, ln=(g_n, bt_n))
    v_proj = _ref_linear(src_flat, W_in, b_in)
    q_heads = jnp.transpose(q_norm.reshape(Hq, Wq, head, hd), (2, 3, 0, 1))
    k_heads = jnp.transpose(k_norm.reshape(MN, Hp, Wp, head, hd), (0, 3, 4, 1, 2))
    k_flat = jnp.transpose(k_heads, (1, 2, 3, 4, 0)).reshape(head, hd * Hp * Wp, MN)
    v_flat = jnp.transpose(v_proj.reshape(MN, Hp, Wp, head, hd),
                           (3, 0, 1, 2, 4)).reshape(head, MN * Hp * Wp, hd)
    q_cols = build_query_cols(q_heads, Hp, Wp)
    scale = float(C * Hp * Wp) ** (-0.5)
    s = jnp.einsum('hpk,hkm->hpm', q_cols, k_flat,
                   precision=jax.lax.Precision.HIGHEST) * scale
    a = jnp.exp(s)
    attn = (a / jnp.max(a, axis=1, keepdims=True)) * (a / jnp.sum(a, axis=2, keepdims=True))
    attn_patch = build_attn_patch(attn, Hq, Wq, Hp, Wp)
    feat = jnp.einsum('hpk,hkd->hpd', attn_patch, v_flat,
                      precision=jax.lax.Precision.HIGHEST)
    feat_flat = jnp.transpose(feat, (1, 0, 2)).reshape(P, C)
    W_out = params["out_conv_w"].reshape(C, C).T
    b_out = params["out_conv_b"].reshape(1, C)
    tgt2 = _ref_linear(feat_flat, W_out, b_out)
    x1 = _layernorm(tgt_flat + tgt2,
                    params["norm1_g"].reshape(1, C), params["norm1_b"].reshape(1, C))
    mid = params["conv1_w"].shape[0]
    W1 = params["conv1_w"].reshape(mid, C * 9).T
    b1 = params["conv1_b"].reshape(1, mid)
    h1 = _ref_linear(build_conv3_patches(x1.reshape(Hq, Wq, C)), W1, b1, relu=True)
    W2 = params["conv2_w"].reshape(C, mid * 9).T
    b2 = params["conv2_b"].reshape(1, C)
    tgt2b = _ref_linear(build_conv3_patches(h1.reshape(Hq, Wq, mid)), W2, b2)
    out = _layernorm(x1 + tgt2b,
                     params["norm2_g"].reshape(1, C), params["norm2_b"].reshape(1, C))
    return jnp.transpose(out.reshape(Hq, Wq, C), (2, 0, 1))[None]


def safecount_block_forward(params, tgt, src, *, head, use_pallas=True):
    """tgt: (1, C, Hq, Wq)  src: (MN, C, Hp, Wp)  ->  (1, C, Hq, Wq)"""
    if use_pallas:
        return _forward_pallas(params, tgt, src, head)
    return _forward_reference(params, tgt, src, head)


# ----------------------------- demo ------------------------------------------

if __name__ == "__main__":
    C, head, mid = 16, 2, 32
    Hq = Wq = 8
    Hp = Wp = 5        # exemplar spatial dims must be odd
    MN = 3

    key = jax.random.PRNGKey(0)
    ks = jax.random.split(key, 18)
    params = {
        "in_conv_w":   0.2 * jax.random.normal(ks[0], (C, C, 1, 1), jnp.float32),
        "in_conv_b":   0.1 * jax.random.normal(ks[1], (C,), jnp.float32),
        "aggt_norm_g": 1.0 + 0.1 * jax.random.normal(ks[2], (C,), jnp.float32),
        "aggt_norm_b": 0.1 * jax.random.normal(ks[3], (C,), jnp.float32),
        "out_conv_w":  0.2 * jax.random.normal(ks[4], (C, C, 1, 1), jnp.float32),
        "out_conv_b":  0.1 * jax.random.normal(ks[5], (C,), jnp.float32),
        "conv1_w":     0.1 * jax.random.normal(ks[6], (mid, C, 3, 3), jnp.float32),
        "conv1_b":     0.05 * jax.random.normal(ks[7], (mid,), jnp.float32),
        "conv2_w":     0.1 * jax.random.normal(ks[8], (C, mid, 3, 3), jnp.float32),
        "conv2_b":     0.05 * jax.random.normal(ks[9], (C,), jnp.float32),
        "norm1_g":     1.0 + 0.1 * jax.random.normal(ks[10], (C,), jnp.float32),
        "norm1_b":     0.1 * jax.random.normal(ks[11], (C,), jnp.float32),
        "norm2_g":     1.0 + 0.1 * jax.random.normal(ks[12], (C,), jnp.float32),
        "norm2_b":     0.1 * jax.random.normal(ks[13], (C,), jnp.float32),
    }
    tgt = jax.random.normal(ks[16], (1, C, Hq, Wq), jnp.float32)
    src = jax.random.normal(ks[17], (MN, C, Hp, Wp), jnp.float32)

    out = safecount_block_forward(params, tgt, src, head=head, use_pallas=True)
    out = jax.block_until_ready(out)

    ref = safecount_block_forward(params, tgt, src, head=head, use_pallas=False)
    ref = jax.block_until_ready(ref)

    assert out.shape == (1, C, Hq, Wq)
    # Kernel feeds the MXU in bf16 (f32 accumulate) and uses the EUP approximate
    # reciprocal; the reference is full-f32 HIGHEST, so the absolute tolerance is
    # set for bf16 error through the LayerNorm'd (unit-scale) output.
    np.testing.assert_allclose(np.asarray(out), np.asarray(ref), rtol=5e-2, atol=7.5e-2)
    print("KERNEL_OK")
</pallas_src>

<mosaic_0001>
module attributes {stable_mosaic.version = 11 : i64} {
  func.func @_proj_ln_kernel(%arg0: i32, %arg1: memref<144x16xbf16, #tpu.memory_space<vmem>>, %arg2: memref<16x16xbf16, #tpu.memory_space<vmem>>, %arg3: memref<1x16xf32, #tpu.memory_space<vmem>>, %arg4: memref<1x16xf32, #tpu.memory_space<vmem>>, %arg5: memref<1x16xf32, #tpu.memory_space<vmem>>, %arg6: memref<144x16xf32, #tpu.memory_space<vmem>>, %arg7: memref<144x16xf32, #tpu.memory_space<vmem>>) attributes {dimension_semantics = [#tpu.dimension_semantics<parallel>], iteration_bounds = array<i64: 1>, scalar_prefetch = 0 : i64, scratch_operands = 0 : i64, tpu.core_type = #tpu.core_type<tc>, window_params = [{transform_indices = @transform_0, window_bounds = array<i64: 144, 16>}, {pipeline_mode = #tpu.pipeline_mode<synchronous>, transform_indices = @transform_1, window_bounds = array<i64: 16, 16>}, {pipeline_mode = #tpu.pipeline_mode<synchronous>, transform_indices = @transform_2, window_bounds = array<i64: 1, 16>}, {pipeline_mode = #tpu.pipeline_mode<synchronous>, transform_indices = @transform_3, window_bounds = array<i64: 1, 16>}, {pipeline_mode = #tpu.pipeline_mode<synchronous>, transform_indices = @transform_4, window_bounds = array<i64: 1, 16>}, {transform_indices = @transform_5, window_bounds = array<i64: 144, 16>}, {transform_indices = @transform_6, window_bounds = array<i64: 144, 16>}]} {
    %c0 = arith.constant 0 : index
    %c0_0 = arith.constant 0 : index
    %0 = vector.load %arg1[%c0, %c0_0] : memref<144x16xbf16, #tpu.memory_space<vmem>>, vector<144x16xbf16>
    %c0_1 = arith.constant 0 : index
    %c0_2 = arith.constant 0 : index
    %1 = vector.load %arg2[%c0_1, %c0_2] : memref<16x16xbf16, #tpu.memory_space<vmem>>, vector<16x16xbf16>
    %cst = arith.constant dense<0.000000e+00> : vector<144x16xf32>
    %2 = tpu.matmul %0, %1, %cst {dimension_numbers = #tpu.dot_dimension_numbers<[1], [0], [0], [1], [0, 0, 1, 1], [], []>} : vector<144x16xbf16>, vector<16x16xbf16>, vector<144x16xf32> -> vector<144x16xf32>
    %c0_3 = arith.constant 0 : index
    %c0_4 = arith.constant 0 : index
    %3 = vector.load %arg3[%c0_3, %c0_4] : memref<1x16xf32, #tpu.memory_space<vmem>>, vector<1x16xf32>
    %4 = vector.broadcast %3 : vector<1x16xf32> to vector<144x16xf32>
    %5 = arith.addf %2, %4 : vector<144x16xf32>
    %c0_5 = arith.constant 0 : index
    %c0_6 = arith.constant 0 : index
    %6 = vector.load %arg7[%c0_5, %c0_6] : memref<144x16xf32, #tpu.memory_space<vmem>>, vector<144x16xf32>
    tpu.vector_store %arg7[%c0_5, %c0_6], %5 {strides = array<i32>} : memref<144x16xf32, #tpu.memory_space<vmem>>, vector<144x16xf32>,
    %c0_7 = arith.constant 0 : index
    %c0_8 = arith.constant 0 : index
    %7 = vector.load %arg4[%c0_7, %c0_8] : memref<1x16xf32, #tpu.memory_space<vmem>>, vector<1x16xf32>
    %c0_9 = arith.constant 0 : index
    %c0_10 = arith.constant 0 : index
    %8 = vector.load %arg5[%c0_9, %c0_10] : memref<1x16xf32, #tpu.memory_space<vmem>>, vector<1x16xf32>
    %cst_11 = arith.constant dense<0.000000e+00> : vector<144xf32>
    %9 = vector.multi_reduction <add>, %5, %cst_11 [1] : vector<144x16xf32> to vector<144xf32>
    %10 = vector.shape_cast %9 : vector<144xf32> to vector<144x1xf32>
    %cst_12 = arith.constant 1.600000e+01 : f32
    %11 = vector.broadcast %cst_12 : f32 to vector<144x1xf32>
    %12 = arith.divf %10, %11 : vector<144x1xf32>
    %13 = vector.broadcast %12 : vector<144x1xf32> to vector<144x16xf32>
    %14 = arith.subf %5, %13 : vector<144x16xf32>
    %15 = arith.mulf %14, %14 : vector<144x16xf32>
    %cst_13 = arith.constant dense<0.000000e+00> : vector<144xf32>
    %16 = vector.multi_reduction <add>, %15, %cst_13 [1] : vector<144x16xf32> to vector<144xf32>
    %17 = vector.shape_cast %16 : vector<144xf32> to vector<144x1xf32>
    %cst_14 = arith.constant 1.600000e+01 : f32
    %18 = vector.broadcast %cst_14 : f32 to vector<144x1xf32>
    %19 = arith.divf %17, %18 : vector<144x1xf32>
    %20 = vector.broadcast %12 : vector<144x1xf32> to vector<144x16xf32>
    %21 = arith.subf %5, %20 : vector<144x16xf32>
    %cst_15 = arith.constant 9.99999974E-6 : f32
    %22 = vector.broadcast %cst_15 : f32 to vector<144x1xf32>
    %23 = arith.addf %19, %22 : vector<144x1xf32>
    %24 = math.rsqrt %23 : vector<144x1xf32>
    %25 = vector.broadcast %24 : vector<144x1xf32> to vector<144x16xf32>
    %26 = arith.mulf %21, %25 : vector<144x16xf32>
    %27 = vector.broadcast %7 : vector<1x16xf32> to vector<144x16xf32>
    %28 = arith.mulf %26, %27 : vector<144x16xf32>
    %29 = vector.broadcast %8 : vector<1x16xf32> to vector<144x16xf32>
    %30 = arith.addf %28, %29 : vector<144x16xf32>
    %c0_16 = arith.constant 0 : index
    %c0_17 = arith.constant 0 : index
    %31 = vector.load %arg6[%c0_16, %c0_17] : memref<144x16xf32, #tpu.memory_space<vmem>>, vector<144x16xf32>
    tpu.vector_store %arg6[%c0_16, %c0_17], %30 {strides = array<i32>} : memref<144x16xf32, #tpu.memory_space<vmem>>, vector<144x16xf32>,
    return
  }
  func.func @transform_0(%arg0: i32) -> (i32, i32) {
    %c0_i32 = arith.constant 0 : i32
    %c0_i32_0 = arith.constant 0 : i32
    return %arg0, %c0_i32 : i32, i32
  }
  func.func @transform_1(%arg0: i32) -> (i32, i32) {
    %c0_i32 = arith.constant 0 : i32
    %c0_i32_0 = arith.constant 0 : i32
    %c0_i32_1 = arith.constant 0 : i32
    return %c0_i32, %c0_i32_0 : i32, i32
  }
  func.func @transform_2(%arg0: i32) -> (i32, i32) {
    %c0_i32 = arith.constant 0 : i32
    %c0_i32_0 = arith.constant 0 : i32
    %c0_i32_1 = arith.constant 0 : i32
    return %c0_i32, %c0_i32_0 : i32, i32
  }
  func.func @transform_3(%arg0: i32) -> (i32, i32) {
    %c0_i32 = arith.constant 0 : i32
    %c0_i32_0 = arith.constant 0 : i32
    %c0_i32_1 = arith.constant 0 : i32
    return %c0_i32, %c0_i32_0 : i32, i32
  }
  func.func @transform_4(%arg0: i32) -> (i32, i32) {
    %c0_i32 = arith.constant 0 : i32
    %c0_i32_0 = arith.constant 0 : i32
    %c0_i32_1 = arith.constant 0 : i32
    return %c0_i32, %c0_i32_0 : i32, i32
  }
  func.func @transform_5(%arg0: i32) -> (i32, i32) {
    %c0_i32 = arith.constant 0 : i32
    %c0_i32_0 = arith.constant 0 : i32
    return %arg0, %c0_i32 : i32, i32
  }
  func.func @transform_6(%arg0: i32) -> (i32, i32) {
    %c0_i32 = arith.constant 0 : i32
    %c0_i32_0 = arith.constant 0 : i32
    return %arg0, %c0_i32 : i32, i32
  }
}

</mosaic_0001>

<bundles_post_ra>
// kernel: tpu_custom_call.1
= control target key start
LH: loop header
LB: loop body
LE: loop exit
PB: predicated region body
PF: predicated region fallthrough
CT: control target
= control target key end

     0   :  { %vm98_vm0 = vcmask 130048   ;;  %s1425_s1 = inlined_call_operand.vmem [shape: bf16[16,16], index: 1, kind: input, shape index: {}]   ;;  %s1426_s0 = inlined_call_operand.vmem [shape: bf16[144,16], index: 0, kind: input, shape index: {}]   ;;  %s1427_s2 = inlined_call_operand.vmem [shape: f32[1,16], index: 2, kind: input, shape index: {}]   ;;  %s1428_s6 = inlined_call_operand.vmem [shape: f32[144,16], index: 6, kind: output, shape index: {1}]   ;;  %s1429_s3 = inlined_call_operand.vmem [shape: f32[1,16], index: 3, kind: input, shape index: {}]   ;;  %s1430_s4 = inlined_call_operand.vmem [shape: f32[1,16], index: 4, kind: input, shape index: {}]   ;;  %s1431_s5 = inlined_call_operand.vmem [shape: f32[144,16], index: 5, kind: output, shape index: {0}]  }
   0x1   :  { %v729_v0 = vld [vmem:[%s1425_s1] sm:$0xff]  ;;  %v721_v2 = vld [vmem:[%s1426_s0 + $0x8] sm:$0xff]  ;;  %v727_v4 = vld [vmem:[%s1426_s0 + $0x38] sm:$0xff] }
   0x2   :  { %v720_v1 = vld [vmem:[%s1426_s0] sm:$0xff]  ;;  %133 = vmatpush.bf16.msra.mxu0 %v729_v0  ;;  %730 = vmatpush.bf16.msra.mxu1 %v729_v0  ;;  %v722_v5 = vld [vmem:[%s1426_s0 + $0x10] sm:$0xff]  ;;  %v725_v6 = vld [vmem:[%s1426_s0 + $0x28] sm:$0xff] }
   0x3   :  { %v724_v3 = vld [vmem:[%s1426_s0 + $0x20] sm:$0xff]  ;;  %731 = vmatpush.bf16.msra.mxu2 %v729_v0  ;;  %732 = vmatpush.bf16.msra.mxu3 %v729_v0  ;;  %v723_v8 = vld [vmem:[%s1426_s0 + $0x18] sm:$0xff]  ;;  %v726_v9 = vld [vmem:[%s1426_s0 + $0x30] sm:$0xff] }
   0x4   :  { %v728_v7 = vld [vmem:[%s1426_s0 + $0x40] sm:$0xff] }
   0x5   :  { %711 = vmatmul.msk.bf16.vlgmr.msra.gmra.mxu0 %vm98_vm0, %v720_v1  ;;  %712 = vmatmul.msk.bf16.vlgmr.msra.gmra.mxu1 %vm98_vm0, %v721_v2  ;;  %v853_v10 = vld [vmem:[%s1427_s2] ss:$0 sm:$0xff]  ;;  %v775_v1 = vmov 16.0  }
   0x6   :  { %715 = vmatmul.msk.bf16.vlgmr.msra.gmra.mxu2 %vm98_vm0, %v724_v3  ;;  %718 = vmatmul.msk.bf16.vlgmr.msra.gmra.mxu3 %vm98_vm0, %v727_v4  ;;  %737 = vrcp.f32 %v775_v1 }
   0xc   :  { %v738_v2 = vpop.eup %737 }
   0xd   :  { %v255_v3 = vmul.f32 16.0, %v738_v2  ;;  %vm259_vm1 = vweird.f32 %v738_v2 }
   0xf   :  { %v256_v4 = vsub.f32 1.0, %v255_v3 }
  0x15   :  { %713 = vmatmul.msk.bf16.gmra.mxu1 %vm98_vm0, %v722_v5  ;;  %v257_v5 = vmul.f32 %v738_v2, %v256_v4 }
  0x16   :  { %716 = vmatmul.msk.bf16.gmra.mxu2 %vm98_vm0, %v725_v6  ;;  %719 = vmatmul.msk.bf16.gmra.mxu3 %vm98_vm0, %v728_v7 }
  0x17   :  { %v258_v6 = vadd.f32 %v738_v2, %v257_v5 }
  0x19   :  { %v1035_v7 = vsel %vm259_vm1, %v738_v2, %v258_v6 }
  0x25   :  { %714 = vmatmul.msk.bf16.gmra.mxu1 %vm98_vm0, %v723_v8 }
  0x26   :  { %717 = vmatmul.msk.bf16.gmra.mxu2 %vm98_vm0, %v726_v9 }
  0x82   :  { %v135_v11 = vpop.f32.mrf.mxu0  ;;  %v140_v12 = vpop.f32.mrf.mxu1 }
  0x83   :  { %v856_v13 = vadd.f32 %v853_v10, %v135_v11  ;;  %v859_v14 = vadd.f32 %v853_v10, %v140_v12 }
  0x85   :  { %180 = vst.msk [vmem:[%s1428_s6] sm:$0xff] %vm98_vm0, %v856_v13  ;;  %v206_v15 = vsel %vm98_vm0, %v859_v14, 0.0  ;;  %v200_v16 = vsel %vm98_vm0, %v856_v13, 0.0 }
  0x86   :  { %182 = vst.msk [vmem:[%s1428_s6 + $0x10] sm:$0xff] %vm98_vm0, %v859_v14  ;;  %207 = vadd.xlane.f32.xlu1 %v206_v15  ;;  %201 = vadd.xlane.f32.xlu0 %v200_v16 }
  0x89   :  { %v155_v17 = vpop.f32.mrf.mxu2  ;;  %v170_v18 = vpop.f32.mrf.mxu3 }
  0x8a   :  { %v876_v19 = vadd.f32 %v853_v10, %v155_v17  ;;  %v137_v20 = vpop.f32.mrf.mxu0  ;;  %v142_v21 = vpop.f32.mrf.mxu1  ;;  %v897_v25 = vadd.f32 %v853_v10, %v170_v18 }
  0x8b   :  { %v879_v22 = vadd.f32 %v853_v10, %v137_v20  ;;  %v882_v23 = vadd.f32 %v853_v10, %v142_v21 }
  0x8c   :  { %188 = vst.msk [vmem:[%s1428_s6 + $0x40] sm:$0xff] %vm98_vm0, %v876_v19  ;;  %v224_v24 = vsel %vm98_vm0, %v876_v19, 0.0  ;;  %v242_v33 = vsel %vm98_vm0, %v897_v25, 0.0 }
  0x8d   :  { %181 = vst.msk [vmem:[%s1428_s6 + $0x8] sm:$0xff] %vm98_vm0, %v879_v22  ;;  %225 = vadd.xlane.f32.xlu2 %v224_v24  ;;  %v209_v26 = vsel %vm98_vm0, %v882_v23, 0.0  ;;  %v203_v27 = vsel %vm98_vm0, %v879_v22, 0.0 }
  0x8e   :  { %183 = vst.msk [vmem:[%s1428_s6 + $0x18] sm:$0xff] %vm98_vm0, %v882_v23  ;;  %210 = vadd.xlane.f32.xlu1 %v209_v26  ;;  %204 = vadd.xlane.f32.xlu0 %v203_v27 }
  0x8f   :  { %194 = vst.msk [vmem:[%s1428_s6 + $0x70] sm:$0xff] %vm98_vm0, %v897_v25 }
  0x91   :  { %v157_v28 = vpop.f32.mrf.mxu2  ;;  %v172_v29 = vpop.f32.mrf.mxu3 }
  0x92   :  { %v914_v30 = vadd.f32 %v853_v10, %v157_v28  ;;  %v145_v31 = vpop.f32.mrf.mxu1  ;;  %v917_v32 = vadd.f32 %v853_v10, %v172_v29 }
  0x93   :  { %v922_v34 = vadd.f32 %v853_v10, %v145_v31 }
  0x94   :  { %189 = vst.msk [vmem:[%s1428_s6 + $0x48] sm:$0xff] %vm98_vm0, %v914_v30  ;;  %v227_v35 = vsel %vm98_vm0, %v914_v30, 0.0  ;;  %v245_v44 = vsel %vm98_vm0, %v917_v32, 0.0 }
  0x95   :  { %184 = vst.msk [vmem:[%s1428_s6 + $0x20] sm:$0xff] %vm98_vm0, %v922_v34  ;;  %243 = vadd.xlane.f32.xlu2 %v242_v33  ;;  %v212_v42 = vsel %vm98_vm0, %v922_v34, 0.0 }
  0x96   :  { %195 = vst.msk [vmem:[%s1428_s6 + $0x78] sm:$0xff] %vm98_vm0, %v917_v32  ;;  %228 = vadd.xlane.f32.xlu0 %v227_v35 }
  0x99   :  { %v160_v36 = vpop.f32.mrf.mxu2  ;;  %v175_v37 = vpop.f32.mrf.mxu3 }
  0x9a   :  { %v942_v38 = vadd.f32 %v853_v10, %v160_v36  ;;  %v147_v39 = vpop.f32.mrf.mxu1  ;;  %v953_v41 = vadd.f32 %v853_v10, %v175_v37 }
  0x9b   :  { %v945_v40 = vadd.f32 %v853_v10, %v147_v39 }
  0x9c   :  { %190 = vst.msk [vmem:[%s1428_s6 + $0x50] sm:$0xff] %vm98_vm0, %v942_v38  ;;  %v230_v43 = vsel %vm98_vm0, %v942_v38, 0.0  ;;  %v248_v50 = vsel %vm98_vm0, %v953_v41, 0.0 }
  0x9d   :  { %185 = vst.msk [vmem:[%s1428_s6 + $0x28] sm:$0xff] %vm98_vm0, %v945_v40  ;;  %213 = vadd.xlane.f32.xlu2 %v212_v42  ;;  %231 = vadd.xlane.f32.xlu1 %v230_v43  ;;  %v215_v52 = vsel %vm98_vm0, %v945_v40, 0.0 }
  0x9e   :  { %196 = vst.msk [vmem:[%s1428_s6 + $0x80] sm:$0xff] %vm98_vm0, %v953_v41  ;;  %246 = vadd.xlane.f32.xlu0 %v245_v44 }
  0xa1   :  { %v162_v45 = vpop.f32.mrf.mxu2  ;;  %v177_v46 = vpop.f32.mrf.mxu3 }
  0xa2   :  { %v972_v47 = vadd.f32 %v853_v10, %v162_v45  ;;  %v150_v48 = vpop.f32.mrf.mxu1  ;;  %v975_v49 = vadd.f32 %v853_v10, %v177_v46 }
  0xa3   :  { %v980_v51 = vadd.f32 %v853_v10, %v150_v48 }
  0xa4   :  { %191 = vst.msk [vmem:[%s1428_s6 + $0x58] sm:$0xff] %vm98_vm0, %v972_v47  ;;  %v233_v58 = vsel %vm98_vm0, %v972_v47, 0.0  ;;  %v251_v63 = vsel %vm98_vm0, %v975_v49, 0.0 }
  0xa5   :  { %186 = vst.msk [vmem:[%s1428_s6 + $0x30] sm:$0xff] %vm98_vm0, %v980_v51  ;;  %216 = vadd.xlane.f32.xlu2 %v215_v52  ;;  %249 = vadd.xlane.f32.xlu1 %v248_v50  ;;  %v218_v53 = vsel %vm98_vm0, %v980_v51, 0.0 }
  0xa6   :  { %197 = vst.msk [vmem:[%s1428_s6 + $0x88] sm:$0xff] %vm98_vm0, %v975_v49  ;;  %219 = vadd.xlane.f32.xlu0 %v218_v53 }
  0xa9   :  { %v165_v54 = vpop.f32.mrf.mxu2 }
  0xaa   :  { %v1002_v55 = vadd.f32 %v853_v10, %v165_v54  ;;  %v152_v56 = vpop.f32.mrf.mxu1 }
  0xab   :  { %v1005_v57 = vadd.f32 %v853_v10, %v152_v56 }
  0xac   :  { %192 = vst.msk [vmem:[%s1428_s6 + $0x60] sm:$0xff] %vm98_vm0, %v1002_v55  ;;  %v236_v59 = vsel %vm98_vm0, %v1002_v55, 0.0 }
  0xad   :  { %187 = vst.msk [vmem:[%s1428_s6 + $0x38] sm:$0xff] %vm98_vm0, %v1005_v57  ;;  %234 = vadd.xlane.f32.xlu2 %v233_v58  ;;  %v221_v60 = vsel %vm98_vm0, %v1005_v57, 0.0 }
  0xae   :  { %222 = vadd.xlane.f32.xlu1 %v221_v60  ;;  %237 = vadd.xlane.f32.xlu0 %v236_v59 }
  0xb1   :  { %v167_v61 = vpop.f32.mrf.mxu2 }
  0xb2   :  { %v1024_v62 = vadd.f32 %v853_v10, %v167_v61 }
  0xb4   :  { %193 = vst.msk [vmem:[%s1428_s6 + $0x68] sm:$0xff] %vm98_vm0, %v1024_v62  ;;  %v239_v0 = vsel %vm98_vm0, %v1024_v62, 0.0 }
  0xb5   :  { %252 = vadd.xlane.f32.xlu2 %v251_v63 }
  0xb6   :  { %240 = vadd.xlane.f32.xlu1 %v239_v0 }
  0xf9   :  { %v208_v8 = vpop.xlane.xlu1 %207  ;;  %v202_v9 = vpop.xlane.xlu0 %201 }
  0xfa   :  { %v263_v10 = vmul.f32 %v1035_v7, %v208_v8  ;;  %v261_v11 = vmul.f32 %v1035_v7, %v202_v9 }
  0xfc   :  { %v1040_v12 = vsub.f32 %v859_v14, %v263_v10  ;;  %v1043_v15 = vsub.f32 %v856_v13, %v261_v11 }
  0xfe   :  { %v299_v16 = vmul.f32 %v1040_v12, %v1040_v12  ;;  %v297_v17 = vmul.f32 %v1043_v15, %v1043_v15 }
 0x100   :  { %v226_v18 = vpop.xlane.xlu2 %225  ;;  %v321_v20 = vsel %vm98_vm0, %v299_v16, 0.0  ;;  %v315_v21 = vsel %vm98_vm0, %v297_v17, 0.0 }
 0x101   :  { %v269_v24 = vmul.f32 %v1035_v7, %v226_v18  ;;  %322 = vadd.xlane.f32.xlu2 %v321_v20  ;;  %v211_v26 = vpop.xlane.xlu1 %210  ;;  %316 = vadd.xlane.f32.xlu0 %v315_v21  ;;  %v205_v14 = vpop.xlane.xlu0 %204 }
 0x102   :  { %v264_v13 = vmul.f32 %v1035_v7, %v211_v26  ;;  %v262_v27 = vmul.f32 %v1035_v7, %v205_v14 }
 0x103   :  { %v1055_v28 = vsub.f32 %v876_v19, %v269_v24 }
 0x104   :  { %v1058_v29 = vsub.f32 %v882_v23, %v264_v13  ;;  %v1061_v31 = vsub.f32 %v879_v22, %v262_v27 }
 0x105   :  { %v305_v33 = vmul.f32 %v1055_v28, %v1055_v28 }
 0x106   :  { %v300_v35 = vmul.f32 %v1058_v29, %v1058_v29  ;;  %v298_v36 = vmul.f32 %v1061_v31, %v1061_v31 }
 0x107   :  { %v339_v39 = vsel %vm98_vm0, %v305_v33, 0.0 }
 0x108   :  { %v244_v37 = vpop.xlane.xlu2 %243  ;;  %v324_v19 = vsel %vm98_vm0, %v300_v35, 0.0  ;;  %v318_v23 = vsel %vm98_vm0, %v298_v36, 0.0 }
 0x109   :  { %v275_v42 = vmul.f32 %v1035_v7, %v244_v37  ;;  %340 = vadd.xlane.f32.xlu2 %v339_v39  ;;  %325 = vadd.xlane.f32.xlu0 %v324_v19  ;;  %v229_v22 = vpop.xlane.xlu0 %228 }
 0x10a   :  { %319 = vadd.xlane.f32.xlu1 %v318_v23  ;;  %v270_v43 = vmul.f32 %v1035_v7, %v229_v22 }
 0x10b   :  { %v1075_v44 = vsub.f32 %v897_v25, %v275_v42 }
 0x10c   :  { %v1078_v45 = vsub.f32 %v914_v30, %v270_v43 }
 0x10d   :  { %v311_v46 = vmul.f32 %v1075_v44, %v1075_v44 }
 0x10e   :  { %v306_v48 = vmul.f32 %v1078_v45, %v1078_v45 }
 0x10f   :  { %v357_v53 = vsel %vm98_vm0, %v311_v46, 0.0 }
 0x110   :  { %v214_v50 = vpop.xlane.xlu2 %213  ;;  %v232_v52 = vpop.xlane.xlu1 %231  ;;  %v342_v54 = vsel %vm98_vm0, %v306_v48, 0.0 }
 0x111   :  { %v265_v56 = vmul.f32 %v1035_v7, %v214_v50  ;;  %358 = vadd.xlane.f32.xlu2 %v357_v53  ;;  %343 = vadd.xlane.f32.xlu0 %v342_v54  ;;  %v247_v25 = vpop.xlane.xlu0 %246  ;;  %v271_v58 = vmul.f32 %v1035_v7, %v232_v52 }
 0x112   :  { %v276_v21 = vmul.f32 %v1035_v7, %v247_v25 }
 0x113   :  { %v1088_v30 = vsub.f32 %v922_v34, %v265_v56  ;;  %v1094_v60 = vsub.f32 %v942_v38, %v271_v58 }
 0x114   :  { %v1135_v33 = vsub.f32 %v917_v32, %v276_v21 }
 0x115   :  { %v301_v59 = vmul.f32 %v1088_v30, %v1088_v30  ;;  %v307_v4 = vmul.f32 %v1094_v60, %v1094_v60 }
 0x116   :  { %v312_v42 = vmul.f32 %v1135_v33, %v1135_v33 }
 0x117   :  { %v327_v61 = vsel %vm98_vm0, %v301_v59, 0.0  ;;  %v345_v9 = vsel %vm98_vm0, %v307_v4, 0.0 }
 0x118   :  { %v217_v63 = vpop.xlane.xlu2 %216  ;;  %328 = vadd.xlane.f32.xlu1 %v327_v61  ;;  %v250_v1 = vpop.xlane.xlu1 %249 }
 0x119   :  { %v266_v0 = vmul.f32 %v1035_v7, %v217_v63  ;;  %v220_v2 = vpop.xlane.xlu0 %219  ;;  %v277_v23 = vmul.f32 %v1035_v7, %v250_v1 }
 0x11a   :  { %v267_v3 = vmul.f32 %v1035_v7, %v220_v2 }
 0x11b   :  { %v1100_v34 = vsub.f32 %v945_v40, %v266_v0  ;;  %v1156_v48 = vsub.f32 %v953_v41, %v277_v23  ;;  %v1191_v23 = vld [vmem:[%s1429_s3] ss:$0 sm:$0xff] }
 0x11c   :  { %v1105_v5 = vsub.f32 %v980_v51, %v267_v3 }
 0x11d   :  { %v302_v38 = vmul.f32 %v1100_v34, %v1100_v34  ;;  %v313_v50 = vmul.f32 %v1156_v48, %v1156_v48 }
 0x11e   :  { %v303_v6 = vmul.f32 %v1105_v5, %v1105_v5 }
 0x11f   :  { %v330_v8 = vsel %vm98_vm0, %v302_v38, 0.0  ;;  %v363_v52 = vsel %vm98_vm0, %v313_v50, 0.0 }
 0x120   :  { %v235_v10 = vpop.xlane.xlu2 %234  ;;  %331 = vadd.xlane.f32.xlu2 %v330_v8  ;;  %346 = vadd.xlane.f32.xlu1 %v345_v9  ;;  %v333_v40 = vsel %vm98_vm0, %v303_v6, 0.0 }
 0x121   :  { %v272_v11 = vmul.f32 %v1035_v7, %v235_v10  ;;  %v223_v16 = vpop.xlane.xlu1 %222  ;;  %334 = vadd.xlane.f32.xlu0 %v333_v40  ;;  %v238_v51 = vpop.xlane.xlu0 %237 }
 0x122   :  { %v268_v17 = vmul.f32 %v1035_v7, %v223_v16  ;;  %v273_v18 = vmul.f32 %v1035_v7, %v238_v51 }
 0x123   :  { %v1118_v20 = vsub.f32 %v972_v47, %v272_v11 }
 0x124   :  { %v1122_v24 = vsub.f32 %v1005_v57, %v268_v17  ;;  %v1125_v26 = vsub.f32 %v1002_v55, %v273_v18 }
 0x125   :  { %v308_v14 = vmul.f32 %v1118_v20, %v1118_v20 }
 0x126   :  { %v304_v13 = vmul.f32 %v1122_v24, %v1122_v24  ;;  %v309_v27 = vmul.f32 %v1125_v26, %v1125_v26 }
 0x127   :  { %v348_v47 = vsel %vm98_vm0, %v308_v14, 0.0 }
 0x128   :  { %v253_v35 = vpop.xlane.xlu2 %252  ;;  %349 = vadd.xlane.f32.xlu2 %v348_v47  ;;  %v336_v57 = vsel %vm98_vm0, %v304_v13, 0.0  ;;  %v351_v55 = vsel %vm98_vm0, %v309_v27, 0.0 }
 0x129   :  { %v278_v36 = vmul.f32 %v1035_v7, %v253_v35  ;;  %v241_v37 = vpop.xlane.xlu1 %240  ;;  %337 = vadd.xlane.f32.xlu1 %v336_v57  ;;  %352 = vadd.xlane.f32.xlu0 %v351_v55 }
 0x12a   :  { %v274_v39 = vmul.f32 %v1035_v7, %v241_v37 }
 0x12b   :  { %v1142_v19 = vsub.f32 %v975_v49, %v278_v36 }
 0x12c   :  { %v1146_v32 = vsub.f32 %v1024_v62, %v274_v39  ;;  %v360_v62 = vsel %vm98_vm0, %v312_v42, 0.0 }
 0x12d   :  { %v314_v22 = vmul.f32 %v1142_v19, %v1142_v19 }
 0x12e   :  { %v310_v43 = vmul.f32 %v1146_v32, %v1146_v32 }
 0x12f   :  { %v366_v46 = vsel %vm98_vm0, %v314_v22, 0.0 }
 0x130   :  { %367 = vadd.xlane.f32.xlu2 %v366_v46  ;;  %v354_v49 = vsel %vm98_vm0, %v310_v43, 0.0 }
 0x131   :  { %355 = vadd.xlane.f32.xlu1 %v354_v49  ;;  %361 = vadd.xlane.f32.xlu0 %v360_v62  ;;  %v1202_v62 = vld [vmem:[%s1430_s4] ss:$0 sm:$0xff] }
 0x139   :  { %364 = vadd.xlane.f32.xlu1 %v363_v52 }
 0x174   :  { %v323_v53 = vpop.xlane.xlu2 %322  ;;  %v317_v54 = vpop.xlane.xlu0 %316 }
 0x175   :  { %v371_v56 = vmul.f32 %v323_v53, %v1035_v7  ;;  %v369_v41 = vmul.f32 %v317_v54, %v1035_v7 }
 0x177   :  { %v389_v25 = vadd.f32 1e-05, %v371_v56  ;;  %v387_v58 = vadd.f32 1e-05, %v369_v41 }
 0x179   :  { %739 = vrsqrt.f32 %v389_v25  ;;  %vm431_vm4 = vweird.f32 %v389_v25  ;;  %vm411_vm6 = vweird.f32 %v387_v58 }
 0x17a   :  { %741 = vrsqrt.f32 %v387_v58 }
 0x17c   :  { %v341_v59 = vpop.xlane.xlu2 %340  ;;  %v326_v61 = vpop.xlane.xlu0 %325 }
 0x17d   :  { %v377_v63 = vmul.f32 %v341_v59, %v1035_v7  ;;  %v320_v0 = vpop.xlane.xlu1 %319  ;;  %v372_v1 = vmul.f32 %v326_v61, %v1035_v7 }
 0x17e   :  { %v370_v2 = vmul.f32 %v320_v0, %v1035_v7 }
 0x17f   :  { %v740_v3 = vpop.eup %739  ;;  %v1168_v4 = vadd.f32 1e-05, %v377_v63  ;;  %v1170_v38 = vadd.f32 1e-05, %v372_v1 }
 0x180   :  { %v742_v6 = vpop.eup %741  ;;  %v426_v8 = vmul.f32 %v740_v3, %v389_v25  ;;  %v1172_v9 = vadd.f32 1e-05, %v370_v2  ;;  %vm432_vm2 = vweird.f32 %v740_v3 }
 0x181   :  { %v406_v10 = vmul.f32 %v742_v6, %v387_v58  ;;  %743 = vrsqrt.f32 %v1168_v4  ;;  %vm412_vm3 = vweird.f32 %v742_v6  ;;  %vm433_vm5 = vmor %vm431_vm4, %vm432_vm2  ;;  %vm491_vm8 = vweird.f32 %v1168_v4 }
 0x182   :  { %v427_v40 = vmul.f32 %v740_v3, %v426_v8  ;;  %745 = vrsqrt.f32 %v1172_v9  ;;  %vm413_vm7 = vmor %vm411_vm6, %vm412_vm3  ;;  %vm421_vm13 = vweird.f32 %v1172_v9  ;;  %vm441_vm15 = vweird.f32 %v1170_v38 }
 0x183   :  { %v407_v11 = vmul.f32 %v742_v6, %v406_v10  ;;  %747 = vrsqrt.f32 %v1170_v38 }
 0x184   :  { %v428_v16 = vmul.f32 0.5, %v427_v40  ;;  %v359_v51 = vpop.xlane.xlu2 %358  ;;  %v344_v17 = vpop.xlane.xlu0 %343 }
 0x185   :  { %v408_v18 = vmul.f32 0.5, %v407_v11  ;;  %v383_v21 = vmul.f32 %v359_v51, %v1035_v7  ;;  %v378_v14 = vmul.f32 %v344_v17, %v1035_v7 }
 0x186   :  { %v429_v13 = vsub.f32 1.5, %v428_v16 }
 0x187   :  { %v744_v27 = vpop.eup %743  ;;  %v409_v47 = vsub.f32 1.5, %v408_v18  ;;  %v1179_v35 = vadd.f32 1e-05, %v383_v21  ;;  %v1184_v37 = vadd.f32 1e-05, %v378_v14 }
 0x188   :  { %v1181_v57 = vpop.eup %745  ;;  %v430_v55 = vmul.f32 %v740_v3, %v429_v13  ;;  %v486_v36 = vmul.f32 %v744_v27, %v1168_v4  ;;  %vm492_vm9 = vweird.f32 %v744_v27 }
 0x189   :  { %v1186_v39 = vpop.eup %747  ;;  %v410_v42 = vmul.f32 %v742_v6, %v409_v47  ;;  %v416_v22 = vmul.f32 %v1181_v57, %v1172_v9  ;;  %749 = vrsqrt.f32 %v1179_v35  ;;  %vm422_vm10 = vweird.f32 %v1181_v57  ;;  %vm493_vm12 = vmor %vm491_vm8, %vm492_vm9 }
 0x18a   :  { %v434_v43 = vsel %vm433_vm5, %v740_v3, %v430_v55  ;;  %v487_v46 = vmul.f32 %v744_v27, %v486_v36  ;;  %v436_v49 = vmul.f32 %v1186_v39, %v1170_v38  ;;  %751 = vrsqrt.f32 %v1184_v37  ;;  %vm423_vm14 = vmor %vm421_vm13, %vm422_vm10 }
 0x18b   :  { %v587_v50 = vmul.f32 %v434_v43, %v1040_v12  ;;  %v414_v52 = vsel %vm413_vm7, %v742_v6, %v410_v42  ;;  %v417_v53 = vmul.f32 %v1181_v57, %v416_v22  ;;  %v329_v54 = vpop.xlane.xlu1 %328  ;;  %vm442_vm11 = vweird.f32 %v1186_v39 }
 0x18c   :  { %v585_v56 = vmul.f32 %v414_v52, %v1043_v15  ;;  %v488_v41 = vmul.f32 0.5, %v487_v46  ;;  %v437_v25 = vmul.f32 %v1186_v39, %v436_v49  ;;  %v373_v61 = vmul.f32 %v329_v54, %v1035_v7  ;;  %vm443_vm1 = vmor %vm441_vm15, %vm442_vm11 }
 0x18d   :  { %v608_v58 = vmul.f32 %v1191_v23, %v587_v50  ;;  %v418_v59 = vmul.f32 0.5, %v417_v53  ;;  %vm551_vm3 = vweird.f32 %v1179_v35  ;;  %vm501_vm6 = vweird.f32 %v1184_v37 }
 0x18e   :  { %v606_v12 = vmul.f32 %v1191_v23, %v585_v56  ;;  %v489_v63 = vsub.f32 1.5, %v488_v41  ;;  %v438_v0 = vmul.f32 0.5, %v437_v25  ;;  %v1216_v3 = vadd.f32 1e-05, %v373_v61 }
 0x18f   :  { %v750_v1 = vpop.eup %749  ;;  %v629_v15 = vadd.f32 %v1202_v62, %v608_v58  ;;  %v419_v2 = vsub.f32 1.5, %v418_v59 }
 0x190   :  { %v627_v6 = vadd.f32 %v1202_v62, %v606_v12  ;;  %v490_v8 = vmul.f32 %v744_v27, %v489_v63  ;;  %v439_v10 = vsub.f32 1.5, %v438_v0  ;;  %v546_v40 = vmul.f32 %v750_v1, %v1179_v35  ;;  %v752_v16 = vpop.eup %751 }
 0x191   :  { %647 = vst.msk [vmem:[%s1431_s5 + $0x10] sm:$0xff] %vm98_vm0, %v629_v15  ;;  %v420_v11 = vmul.f32 %v1181_v57, %v419_v2  ;;  %753 = vrsqrt.f32 %v1216_v3  ;;  %vm552_vm2 = vweird.f32 %v750_v1  ;;  %v496_v21 = vmul.f32 %v752_v16, %v1184_v37 }
 0x192   :  { %645 = vst.msk [vmem:[%s1431_s5] sm:$0xff] %vm98_vm0, %v627_v6  ;;  %v494_v51 = vsel %vm493_vm12, %v744_v27, %v490_v8  ;;  %v440_v17 = vmul.f32 %v1186_v39, %v439_v10  ;;  %v547_v4 = vmul.f32 %v750_v1, %v546_v40  ;;  %vm553_vm4 = vmor %vm551_vm3, %vm552_vm2  ;;  %vm502_vm5 = vweird.f32 %v752_v16 }
 0x193   :  { %v593_v18 = vmul.f32 %v494_v51, %v1055_v28  ;;  %v424_v9 = vsel %vm423_vm14, %v1181_v57, %v420_v11  ;;  %v332_v14 = vpop.xlane.xlu2 %331  ;;  %v347_v13 = vpop.xlane.xlu1 %346  ;;  %v497_v42 = vmul.f32 %v752_v16, %v496_v21  ;;  %vm503_vm7 = vmor %vm501_vm6, %vm502_vm5  ;;  %vm451_vm9 = vweird.f32 %v1216_v3 }
 0x194   :  { %v586_v27 = vmul.f32 %v424_v9, %v1061_v31  ;;  %v444_v47 = vsel %vm443_vm1, %v1186_v39, %v440_v17  ;;  %v548_v55 = vmul.f32 0.5, %v547_v4  ;;  %v374_v38 = vmul.f32 %v332_v14, %v1035_v7  ;;  %v335_v36 = vpop.xlane.xlu0 %334 }
 0x195   :  { %v614_v28 = vmul.f32 %v1191_v23, %v593_v18  ;;  %v588_v57 = vmul.f32 %v444_v47, %v1058_v29  ;;  %v379_v22 = vmul.f32 %v347_v13, %v1035_v7  ;;  %v375_v31 = vmul.f32 %v335_v36, %v1035_v7 }
 0x196   :  { %v607_v43 = vmul.f32 %v1191_v23, %v586_v27  ;;  %v549_v46 = vsub.f32 1.5, %v548_v55  ;;  %v1250_v49 = vadd.f32 1e-05, %v374_v38  ;;  %v498_v53 = vmul.f32 0.5, %v497_v42 }
 0x197   :  { %v754_v50 = vpop.eup %753  ;;  %v635_v39 = vadd.f32 %v1202_v62, %v614_v28  ;;  %v609_v52 = vmul.f32 %v1191_v23, %v588_v57  ;;  %v1255_v54 = vadd.f32 1e-05, %v379_v22  ;;  %v1278_v63 = vadd.f32 1e-05, %v375_v31 }
 0x198   :  { %v628_v29 = vadd.f32 %v1202_v62, %v607_v43  ;;  %v550_v56 = vmul.f32 %v750_v1, %v549_v46  ;;  %v446_v41 = vmul.f32 %v754_v50, %v1216_v3  ;;  %v499_v58 = vsub.f32 1.5, %v498_v53 }
 0x199   :  { %653 = vst.msk [vmem:[%s1431_s5 + $0x40] sm:$0xff] %vm98_vm0, %v635_v39  ;;  %v630_v25 = vadd.f32 %v1202_v62, %v609_v52  ;;  %755 = vrsqrt.f32 %v1250_v49  ;;  %vm452_vm8 = vweird.f32 %v754_v50  ;;  %vm461_vm11 = vweird.f32 %v1250_v49 }
 0x19a   :  { %646 = vst.msk [vmem:[%s1431_s5 + $0x8] sm:$0xff] %vm98_vm0, %v628_v29  ;;  %v554_v35 = vsel %vm553_vm4, %v750_v1, %v550_v56  ;;  %v447_v59 = vmul.f32 %v754_v50, %v446_v41  ;;  %757 = vrsqrt.f32 %v1255_v54  ;;  %v500_v12 = vmul.f32 %v752_v16, %v499_v58  ;;  %vm453_vm10 = vmor %vm451_vm9, %vm452_vm8 }
 0x19b   :  { %648 = vst.msk [vmem:[%s1431_s5 + $0x18] sm:$0xff] %vm98_vm0, %v630_v25  ;;  %v599_v61 = vmul.f32 %v554_v35, %v1075_v44  ;;  %v350_v0 = vpop.xlane.xlu2 %349  ;;  %759 = vrsqrt.f32 %v1278_v63  ;;  %vm511_vm12 = vweird.f32 %v1255_v54  ;;  %vm471_vm15 = vweird.f32 %v1278_v63 }
 0x19c   :  { %v448_v15 = vmul.f32 0.5, %v447_v59  ;;  %v380_v1 = vmul.f32 %v350_v0, %v1035_v7  ;;  %v338_v2 = vpop.xlane.xlu1 %337  ;;  %v353_v6 = vpop.xlane.xlu0 %352  ;;  %v504_v10 = vsel %vm503_vm7, %v752_v16, %v500_v12 }
 0x19d   :  { %v620_v8 = vmul.f32 %v1191_v23, %v599_v61  ;;  %v594_v44 = vmul.f32 %v504_v10, %v1078_v45  ;;  %v376_v37 = vmul.f32 %v338_v2, %v1035_v7  ;;  %v381_v4 = vmul.f32 %v353_v6, %v1035_v7 }
 0x19e   :  { %v449_v40 = vsub.f32 1.5, %v448_v15  ;;  %v1284_v11 = vadd.f32 1e-05, %v380_v1 }
 0x19f   :  { %v756_v51 = vpop.eup %755  ;;  %v641_v17 = vadd.f32 %v1202_v62, %v620_v8  ;;  %v615_v9 = vmul.f32 %v1191_v23, %v594_v44  ;;  %v1300_v47 = vadd.f32 1e-05, %v376_v37  ;;  %v1303_v36 = vadd.f32 1e-05, %v381_v4 }
 0x1a0   :  { %v758_v18 = vpop.eup %757  ;;  %v450_v21 = vmul.f32 %v754_v50, %v449_v40  ;;  %v456_v16 = vmul.f32 %v756_v51, %v1250_v49  ;;  %761 = vrsqrt.f32 %v1284_v11  ;;  %vm462_vm13 = vweird.f32 %v756_v51 }
 0x1a1   :  { %659 = vst.msk [vmem:[%s1431_s5 + $0x70] sm:$0xff] %vm98_vm0, %v641_v17  ;;  %v506_v45 = vmul.f32 %v758_v18, %v1255_v54  ;;  %v636_v14 = vadd.f32 %v1202_v62, %v615_v9  ;;  %v760_v3 = vpop.eup %759  ;;  %763 = vrsqrt.f32 %v1300_v47  ;;  %vm512_vm14 = vweird.f32 %v758_v18  ;;  %vm463_vm1 = vmor %vm461_vm11, %vm462_vm13 }
 0x1a2   :  { %v454_v13 = vsel %vm453_vm10, %v754_v50, %v450_v21  ;;  %v457_v27 = vmul.f32 %v756_v51, %v456_v16  ;;  %v466_v42 = vmul.f32 %v760_v3, %v1278_v63  ;;  %765 = vrsqrt.f32 %v1303_v36  ;;  %vm513_vm3 = vmor %vm511_vm12, %vm512_vm14 }
 0x1a3   :  { %v589_v55 = vmul.f32 %v454_v13, %v1088_v30  ;;  %v507_v38 = vmul.f32 %v758_v18, %v506_v45  ;;  %v368_v28 = vpop.xlane.xlu2 %367  ;;  %654 = vst.msk [vmem:[%s1431_s5 + $0x48] sm:$0xff] %vm98_vm0, %v636_v14  ;;  %vm472_vm2 = vweird.f32 %v760_v3  ;;  %vm521_vm6 = vweird.f32 %v1284_v11 }
 0x1a4   :  { %v458_v57 = vmul.f32 0.5, %v457_v27  ;;  %v356_v22 = vpop.xlane.xlu1 %355  ;;  %v467_v31 = vmul.f32 %v760_v3, %v466_v42  ;;  %v386_v50 = vmul.f32 %v368_v28, %v1035_v7  ;;  %v362_v39 = vpop.xlane.xlu0 %361  ;;  %vm473_vm5 = vmor %vm471_vm15, %vm472_vm2  ;;  %vm481_vm10 = vweird.f32 %v1300_v47 }
 0x1a5   :  { %v610_v43 = vmul.f32 %v1191_v23, %v589_v55  ;;  %v508_v30 = vmul.f32 0.5, %v507_v38  ;;  %v382_v56 = vmul.f32 %v356_v22, %v1035_v7  ;;  %v384_v61 = vmul.f32 %v362_v39, %v1035_v7 }
 0x1a6   :  { %v459_v46 = vsub.f32 1.5, %v458_v57  ;;  %v762_v52 = vpop.eup %761  ;;  %v468_v25 = vmul.f32 0.5, %v467_v31  ;;  %v1326_v59 = vadd.f32 1e-05, %v386_v50  ;;  %vm531_vm12 = vweird.f32 %v1303_v36 }
 0x1a7   :  { %v631_v53 = vadd.f32 %v1202_v62, %v610_v43  ;;  %v509_v29 = vsub.f32 1.5, %v508_v30  ;;  %v516_v58 = vmul.f32 %v762_v52, %v1284_v11  ;;  %v764_v12 = vpop.eup %763  ;;  %vm522_vm4 = vweird.f32 %v762_v52 }
 0x1a8   :  { %v460_v41 = vmul.f32 %v756_v51, %v459_v46  ;;  %v469_v15 = vsub.f32 1.5, %v468_v25  ;;  %v766_v2 = vpop.eup %765  ;;  %v476_v49 = vmul.f32 %v764_v12, %v1300_v47  ;;  %v1333_v10 = vadd.f32 1e-05, %v382_v56  ;;  %vm523_vm7 = vmor %vm521_vm6, %vm522_vm4 }
 0x1a9   :  { %649 = vst.msk [vmem:[%s1431_s5 + $0x20] sm:$0xff] %vm98_vm0, %v631_v53  ;;  %v510_v35 = vmul.f32 %v758_v18, %v509_v29  ;;  %v517_v1 = vmul.f32 %v762_v52, %v516_v58  ;;  %767 = vrsqrt.f32 %v1326_v59  ;;  %vm482_vm8 = vweird.f32 %v764_v12 }
 0x1aa   :  { %v464_v0 = vsel %vm463_vm1, %v756_v51, %v460_v41  ;;  %v470_v40 = vmul.f32 %v760_v3, %v469_v15  ;;  %v526_v51 = vmul.f32 %v766_v2, %v1303_v36  ;;  %v477_v17 = vmul.f32 %v764_v12, %v476_v49  ;;  %vm483_vm11 = vmor %vm481_vm10, %vm482_vm8 }
 0x1ab   :  { %v590_v6 = vmul.f32 %v464_v0, %v1100_v34  ;;  %v514_v8 = vsel %vm513_vm3, %v758_v18, %v510_v35  ;;  %v518_v37 = vmul.f32 0.5, %v517_v1  ;;  %v1342_v34 = vadd.f32 1e-05, %v384_v61 }
 0x1ac   :  { %v595_v44 = vmul.f32 %v514_v8, %v1094_v60  ;;  %v474_v18 = vsel %vm473_vm5, %v760_v3, %v470_v40  ;;  %v527_v60 = vmul.f32 %v766_v2, %v526_v51  ;;  %v478_v45 = vmul.f32 0.5, %v477_v17  ;;  %v365_v14 = vpop.xlane.xlu1 %364 }
 0x1ad   :  { %v611_v54 = vmul.f32 %v1191_v23, %v590_v6  ;;  %v519_v9 = vsub.f32 1.5, %v518_v37  ;;  %v591_v16 = vmul.f32 %v474_v18, %v1105_v5  ;;  %769 = vrsqrt.f32 %v1333_v10 }
 0x1ae   :  { %v616_v4 = vmul.f32 %v1191_v23, %v595_v44  ;;  %v528_v27 = vmul.f32 0.5, %v527_v60  ;;  %v479_v5 = vsub.f32 1.5, %v478_v45  ;;  %771 = vrsqrt.f32 %v1342_v34 }
 0x1af   :  { %v632_v21 = vadd.f32 %v1202_v62, %v611_v54  ;;  %v520_v13 = vmul.f32 %v762_v52, %v519_v9  ;;  %v612_v3 = vmul.f32 %v1191_v23, %v591_v16  ;;  %vm532_vm9 = vweird.f32 %v766_v2  ;;  %v768_v28 = vpop.eup %767 }
 0x1b0   :  { %v637_v63 = vadd.f32 %v1202_v62, %v616_v4  ;;  %v529_v55 = vsub.f32 1.5, %v528_v27  ;;  %v385_v38 = vmul.f32 %v365_v14, %v1035_v7  ;;  %v480_v22 = vmul.f32 %v764_v12, %v479_v5  ;;  %vm533_vm13 = vmor %vm531_vm12, %vm532_vm9 }
 0x1b1   :  { %650 = vst.msk [vmem:[%s1431_s5 + $0x28] sm:$0xff] %vm98_vm0, %v632_v21  ;;  %v524_v11 = vsel %vm523_vm7, %v762_v52, %v520_v13  ;;  %v633_v57 = vadd.f32 %v1202_v62, %v612_v3  ;;  %v576_v30 = vmul.f32 %v768_v28, %v1326_v59  ;;  %vm582_vm14 = vweird.f32 %v768_v28 }
 0x1b2   :  { %655 = vst.msk [vmem:[%s1431_s5 + $0x50] sm:$0xff] %vm98_vm0, %v637_v63  ;;  %v596_v42 = vmul.f32 %v524_v11, %v1118_v20  ;;  %v530_v43 = vmul.f32 %v766_v2, %v529_v55  ;;  %v403_v46 = vadd.f32 1e-05, %v385_v38  ;;  %v484_v31 = vsel %vm483_vm11, %v764_v12, %v480_v22 }
 0x1b3   :  { %651 = vst.msk [vmem:[%s1431_s5 + $0x30] sm:$0xff] %vm98_vm0, %v633_v57  ;;  %v770_v20 = vpop.eup %769  ;;  %v592_v47 = vmul.f32 %v484_v31, %v1122_v24  ;;  %v577_v39 = vmul.f32 %v768_v28, %v576_v30  ;;  %vm581_vm15 = vweird.f32 %v1326_v59  ;;  %vm541_vm4 = vweird.f32 %v1333_v10 }
 0x1b4   :  { %v617_v7 = vmul.f32 %v1191_v23, %v596_v42  ;;  %v534_v50 = vsel %vm533_vm13, %v766_v2, %v530_v43  ;;  %773 = vrsqrt.f32 %v403_v46  ;;  %v772_v36 = vpop.eup %771  ;;  %v536_v29 = vmul.f32 %v770_v20, %v1333_v10  ;;  %vm583_vm1 = vmor %vm581_vm15, %vm582_vm14 }
 0x1b5   :  { %v597_v53 = vmul.f32 %v534_v50, %v1125_v26  ;;  %v613_v56 = vmul.f32 %v1191_v23, %v592_v47  ;;  %v578_v41 = vmul.f32 0.5, %v577_v39  ;;  %v556_v25 = vmul.f32 %v772_v36, %v1342_v34 }
 0x1b6   :  { %v638_v52 = vadd.f32 %v1202_v62, %v617_v7  ;;  %v537_v58 = vmul.f32 %v770_v20, %v536_v29  ;;  %vm542_vm2 = vweird.f32 %v770_v20  ;;  %vm562_vm3 = vweird.f32 %v772_v36 }
 0x1b7   :  { %v618_v24 = vmul.f32 %v1191_v23, %v597_v53  ;;  %v634_v35 = vadd.f32 %v1202_v62, %v613_v56  ;;  %v579_v61 = vsub.f32 1.5, %v578_v41  ;;  %v557_v26 = vmul.f32 %v772_v36, %v556_v25  ;;  %vm543_vm5 = vmor %vm541_vm4, %vm542_vm2 }
 0x1b8   :  { %656 = vst.msk [vmem:[%s1431_s5 + $0x58] sm:$0xff] %vm98_vm0, %v638_v52  ;;  %v538_v0 = vmul.f32 0.5, %v537_v58  ;;  %vm561_vm6 = vweird.f32 %v1342_v34  ;;  %vm571_vm9 = vweird.f32 %v403_v46 }
 0x1b9   :  { %v639_v12 = vadd.f32 %v1202_v62, %v618_v24  ;;  %652 = vst.msk [vmem:[%s1431_s5 + $0x38] sm:$0xff] %vm98_vm0, %v634_v35  ;;  %v580_v1 = vmul.f32 %v768_v28, %v579_v61  ;;  %v558_v2 = vmul.f32 0.5, %v557_v26  ;;  %vm563_vm7 = vmor %vm561_vm6, %vm562_vm3 }
 0x1ba   :  { %v774_v15 = vpop.eup %773  ;;  %v539_v6 = vsub.f32 1.5, %v538_v0 }
 0x1bb   :  { %657 = vst.msk [vmem:[%s1431_s5 + $0x60] sm:$0xff] %vm98_vm0, %v639_v12  ;;  %v566_v8 = vmul.f32 %v774_v15, %v403_v46  ;;  %v584_v49 = vsel %vm583_vm1, %v768_v28, %v580_v1  ;;  %v559_v44 = vsub.f32 1.5, %v558_v2  ;;  %vm572_vm8 = vweird.f32 %v774_v15 }
 0x1bc   :  { %v602_v40 = vmul.f32 %v584_v49, %v1142_v19  ;;  %v540_v37 = vmul.f32 %v770_v20, %v539_v6  ;;  %vm573_vm10 = vmor %vm571_vm9, %vm572_vm8 }
 0x1bd   :  { %v567_v51 = vmul.f32 %v774_v15, %v566_v8  ;;  %v560_v59 = vmul.f32 %v772_v36, %v559_v44 }
 0x1be   :  { %v623_v54 = vmul.f32 %v1191_v23, %v602_v40  ;;  %v544_v17 = vsel %vm543_vm5, %v770_v20, %v540_v37 }
 0x1bf   :  { %v568_v4 = vmul.f32 0.5, %v567_v51  ;;  %v598_v18 = vmul.f32 %v544_v17, %v1146_v32  ;;  %v564_v9 = vsel %vm563_vm7, %v772_v36, %v560_v59 }
 0x1c0   :  { %v644_v60 = vadd.f32 %v1202_v62, %v623_v54  ;;  %v600_v19 = vmul.f32 %v564_v9, %v1135_v33 }
 0x1c1   :  { %v569_v21 = vsub.f32 1.5, %v568_v4  ;;  %v619_v10 = vmul.f32 %v1191_v23, %v598_v18 }
 0x1c2   :  { %662 = vst.msk [vmem:[%s1431_s5 + $0x88] sm:$0xff] %vm98_vm0, %v644_v60  ;;  %v621_v34 = vmul.f32 %v1191_v23, %v600_v19 }
 0x1c3   :  { %v570_v16 = vmul.f32 %v774_v15, %v569_v21  ;;  %v640_v32 = vadd.f32 %v1202_v62, %v619_v10 }
 0x1c4   :  { %v642_v45 = vadd.f32 %v1202_v62, %v621_v34 }
 0x1c5   :  { %v574_v14 = vsel %vm573_vm10, %v774_v15, %v570_v16  ;;  %658 = vst.msk [vmem:[%s1431_s5 + $0x68] sm:$0xff] %vm98_vm0, %v640_v32 }
 0x1c6   :  { %v601_v33 = vmul.f32 %v574_v14, %v1156_v48  ;;  %660 = vst.msk [vmem:[%s1431_s5 + $0x78] sm:$0xff] %vm98_vm0, %v642_v45 }
 0x1c8   :  { %v622_v63 = vmul.f32 %v1191_v23, %v601_v33 }
 0x1ca   :  { %v643_v13 = vadd.f32 %v1202_v62, %v622_v63 }
 0x1cc   :  { %661 = vst.msk [vmem:[%s1431_s5 + $0x80] sm:$0xff] %vm98_vm0, %v643_v13 }

</bundles_post_ra>
